<compile_context>
chip_gen: v5e
topology: v5e:2x2
jax: 0.10.0
libtpu: 0.0.40
codegen_flags: <defaults>
</compile_context>

<pallas_src>
import functools

import jax
import jax.numpy as jnp
from jax.experimental import pallas as pl
from jax.experimental.pallas import tpu as pltpu

LN_EPS = 1e-5  # torch.nn.LayerNorm default


def _cdiv(a, b):
    return -(-a // b)


def _round_up(a, b):
    return _cdiv(a, b) * b


def _patch_merging_kernel(x_ref, w_ref, b_ref, o_ref):
    # x_ref: (TR, D) merged-token rows
    # w_ref: (D, TO) gamma-folded weight tile
    # b_ref: (1, TO) f32 bias row (= beta @ W)
    # o_ref: (TR, TO)
    #
    # NOTE: rows of the tail tile beyond the logical array end contain stale
    # VMEM data (possibly inf/NaN).  That is safe only because every output
    # row depends solely on its own input row (no cross-row reduction) and
    # those rows are masked on store.
    x = x_ref[...].astype(jnp.float32)

    # LayerNorm statistics in f32 (biased variance, matching torch).
    mean = jnp.mean(x, axis=-1, keepdims=True)
    centered = x - mean
    var = jnp.mean(centered * centered, axis=-1, keepdims=True)
    x_hat = centered * jax.lax.rsqrt(var + LN_EPS)

    # MXU operands stay in the native input/weight dtype (bf16 inputs keep a
    # bf16 matmul -> looser tolerance vs an all-f32 reference); f32 accumulate.
    x_hat = x_hat.astype(x_ref.dtype)
    acc = jnp.dot(x_hat, w_ref[...], preferred_element_type=jnp.float32)
    o_ref[...] = (acc + b_ref[...]).astype(o_ref.dtype)


def _vmem_capacity_bytes():
    """Physical VMEM per TensorCore; conservative (v7x-class) fallback."""
    try:
        cap = getattr(pltpu.get_tpu_info(), "vmem_capacity_bytes", None)
        if cap:
            return int(cap)
    except Exception:
        pass
    return 64 * 1024 * 1024


def _pick_tiles(rows, D, out_dim, x_it, w_it, o_it):
    """Generation-aware (row tile, out-column tile, scoped vmem limit)."""
    small_vmem = _vmem_capacity_bytes() <= 64 * 1024 * 1024  # v7x-class
    if small_vmem:
        budget, limit_cap, min_steps, target_rows = (40 << 20, 48 << 20, 4, 512)
    else:  # v5e / v6e: 128 MiB physical -> take the biggest tiles that fit
        budget, limit_cap, min_steps, target_rows = (96 << 20, 110 << 20, 1, 1024)

    gran = max(8, 32 // x_it)  # sublane pack: 8 f32, 16 bf16, 32 int8/fp8

    # Column tiling only when the (double-buffered) resident weight would not
    # leave room for large row tiles.
    if 2 * D * out_dim * w_it > budget // 3:
        cols = max(128, ((budget // 3) // (2 * D * w_it)) // 128 * 128)
        tile_out = int(min(cols, _round_up(out_dim, 128)))
    else:
        tile_out = int(out_dim)

    t = min(target_rows, _round_up(rows, gran))
    if min_steps > 1:  # only on v7x: feed both TensorCores via 'parallel' axis
        t = min(t, _round_up(_cdiv(rows, min_steps), gran))
    t = max(gran, (t // gran) * gran)
    if t >= 256:
        t = (t // 256) * 256  # full-M MXU passes

    def need(tr):
        return (2 * tr * D * x_it            # x tile, double buffered
                + 2 * tr * tile_out * o_it   # out tile, double buffered
                + 2 * D * tile_out * w_it    # weight (resident, 2 buffers)
                + 2 * tile_out * 4           # bias row
                + 2 * tr * D * 4             # f32 LN temporaries (margin)
                + tr * tile_out * 4)         # f32 accumulator (margin)

    while t > gran and need(t) > budget:
        t = max(gran, ((t // 2) // gran) * gran)

    vmem_limit = int(min(max(need(t) + (8 << 20), 32 << 20), limit_cap))
    return t, tile_out, vmem_limit


@functools.partial(jax.jit, static_argnames=("down_factor",))
def patch_merging(x, ln_gamma, ln_beta, w_t, *, down_factor=2):
    """x: (B, N, C). w_t: (down_factor*C, out_dim) (transposed torch weight).
    Returns (B, ceil(N/down_factor), out_dim), matching PatchMerging.forward."""
    B, N, C = x.shape
    D = down_factor * C
    out_dim = w_t.shape[1]

    # --- token padding (repeat last token), exactly like the PyTorch module -
    # TODO(synk): this concat materializes one extra HBM copy of x whenever
    # N % down_factor != 0; a zero-copy variant would merge raw (B, N, C)
    # token tiles in-kernel and synthesize the repeated last token there.
    remainder = N % down_factor
    if remainder != 0:
        pad_tokens = jnp.repeat(x[:, -1:, :], down_factor - remainder, axis=1)
        x = jnp.concatenate([x, pad_tokens], axis=1)
        N = x.shape[1]
    num_patch = N // down_factor
    rows = B * num_patch
    x2d = x.reshape(rows, D)          # contiguous -> free view, no extra pass

    # --- fold gamma into W; bias row = beta @ W ------------------------------
    w_f32 = w_t.astype(jnp.float32)
    w_folded = (w_f32 * ln_gamma.astype(jnp.float32)[:, None]).astype(w_t.dtype)
    bias = ln_beta.astype(jnp.float32)[None, :] @ w_f32          # (1, out_dim)

    x_it = jnp.dtype(x.dtype).itemsize
    w_it = jnp.dtype(w_folded.dtype).itemsize
    o_it = x_it
    tile_rows, tile_out, vmem_limit = _pick_tiles(rows, D, out_dim,
                                                  x_it, w_it, o_it)

    grid = (_cdiv(rows, tile_rows), _cdiv(out_dim, tile_out))

    cost = pl.CostEstimate(
        flops=2 * rows * D * out_dim,
        transcendentals=rows,
        bytes_accessed=(rows * D * x_it + D * out_dim * w_it
                        + out_dim * 4 + rows * out_dim * o_it),
    )

    out2d = pl.pallas_call(
        _patch_merging_kernel,
        out_shape=jax.ShapeDtypeStruct((rows, out_dim), x.dtype),
        grid_spec=pltpu.PrefetchScalarGridSpec(
            num_scalar_prefetch=0,
            grid=grid,
            in_specs=[
                pl.BlockSpec((tile_rows, D), lambda i, j: (i, 0)),   # x rows
                pl.BlockSpec((D, tile_out), lambda i, j: (0, j)),    # weight
                pl.BlockSpec((1, tile_out), lambda i, j: (0, j)),    # bias row
            ],
            out_specs=pl.BlockSpec((tile_rows, tile_out), lambda i, j: (i, j)),
        ),
        compiler_params=pltpu.CompilerParams(
            dimension_semantics=("parallel", "parallel"),
            vmem_limit_bytes=vmem_limit,
        ),
        cost_estimate=cost,
    )(x2d, w_folded, bias)

    return out2d.reshape(B, num_patch, out_dim)       # free reshape


def reference(x, ln_gamma, ln_beta, w_t, down_factor=2):
    """Pure-JAX reference matching the PyTorch forward exactly."""
    B, N, C = x.shape
    remainder = N % down_factor
    if remainder != 0:
        pad_tokens = jnp.repeat(x[:, -1:, :], down_factor - remainder, axis=1)
        x = jnp.concatenate([x, pad_tokens], axis=1)
        N = x.shape[1]
    num_patch = N // down_factor
    x = x.reshape(B, num_patch, down_factor * C)
    mean = jnp.mean(x, axis=-1, keepdims=True)
    var = jnp.mean((x - mean) ** 2, axis=-1, keepdims=True)
    xh = (x - mean) / jnp.sqrt(var + LN_EPS)
    xh = xh * ln_gamma + ln_beta
    return xh @ w_t


if __name__ == "__main__":
    def run_case(key, B, N, C, out_dim, down_factor):
        kx, kw, kg, kb = jax.random.split(key, 4)
        D = down_factor * C
        x = jax.random.normal(kx, (B, N, C), dtype=jnp.float32)
        # torch nn.Linear(D, out_dim, bias=False).weight is (out_dim, D);
        # we carry its transpose (D, out_dim).
        w_t = (jax.random.normal(kw, (out_dim, D), dtype=jnp.float32) * 0.02).T
        ln_gamma = 1.0 + 0.1 * jax.random.normal(kg, (D,), dtype=jnp.float32)
        ln_beta = 0.1 * jax.random.normal(kb, (D,), dtype=jnp.float32)

        out = jax.block_until_ready(
            patch_merging(x, ln_gamma, ln_beta, w_t, down_factor=down_factor))
        ref = reference(x, ln_gamma, ln_beta, w_t, down_factor=down_factor)

        num_patch = -(-N // down_factor)
        assert out.shape == (B, num_patch, out_dim), out.shape
        err = float(jnp.max(jnp.abs(out - ref)))
        assert jnp.allclose(out, ref, atol=1e-4, rtol=1e-4), err

    key = jax.random.PRNGKey(0)
    k1, k2 = jax.random.split(key)
    # Odd token count: exercises repeat-last-token padding, a partial row
    # tile, and a non-128-multiple output width (masked-store path).
    run_case(k1, B=2, N=9, C=32, out_dim=64, down_factor=2)
    # Even token count: exercises the copy-free merge path and a 128-aligned
    # lane-dense output.
    run_case(k2, B=2, N=16, C=32, out_dim=128, down_factor=2)

    print("KERNEL_OK")
</pallas_src>

<mosaic_0001>
module attributes {stable_mosaic.version = 11 : i64} {
  func.func @_patch_merging_kernel(%arg0: i32, %arg1: i32, %arg2: memref<8x64xf32, #tpu.memory_space<vmem>>, %arg3: memref<64x64xf32, #tpu.memory_space<vmem>>, %arg4: memref<1x64xf32, #tpu.memory_space<vmem>>, %arg5: memref<8x64xf32, #tpu.memory_space<vmem>>) attributes {dimension_semantics = [#tpu.dimension_semantics<parallel>, #tpu.dimension_semantics<parallel>], iteration_bounds = array<i64: 2, 1>, scalar_prefetch = 0 : i64, scratch_operands = 0 : i64, tpu.core_type = #tpu.core_type<tc>, window_params = [{transform_indices = @transform_0, window_bounds = array<i64: 8, 64>}, {transform_indices = @transform_1, window_bounds = array<i64: 64, 64>}, {transform_indices = @transform_2, window_bounds = array<i64: 1, 64>}, {transform_indices = @transform_3, window_bounds = array<i64: 8, 64>}]} {
    %c0 = arith.constant 0 : index
    %c0_0 = arith.constant 0 : index
    %0 = vector.load %arg2[%c0, %c0_0] : memref<8x64xf32, #tpu.memory_space<vmem>>, vector<8x64xf32>
    %cst = arith.constant dense<0.000000e+00> : vector<8xf32>
    %1 = vector.multi_reduction <add>, %0, %cst [1] : vector<8x64xf32> to vector<8xf32>
    %2 = vector.shape_cast %1 : vector<8xf32> to vector<8x1xf32>
    %cst_1 = arith.constant 6.400000e+01 : f32
    %3 = vector.broadcast %cst_1 : f32 to vector<8x1xf32>
    %4 = arith.divf %2, %3 : vector<8x1xf32>
    %5 = vector.broadcast %4 : vector<8x1xf32> to vector<8x64xf32>
    %6 = arith.subf %0, %5 : vector<8x64xf32>
    %7 = arith.mulf %6, %6 : vector<8x64xf32>
    %cst_2 = arith.constant dense<0.000000e+00> : vector<8xf32>
    %8 = vector.multi_reduction <add>, %7, %cst_2 [1] : vector<8x64xf32> to vector<8xf32>
    %9 = vector.shape_cast %8 : vector<8xf32> to vector<8x1xf32>
    %cst_3 = arith.constant 6.400000e+01 : f32
    %10 = vector.broadcast %cst_3 : f32 to vector<8x1xf32>
    %11 = arith.divf %9, %10 : vector<8x1xf32>
    %cst_4 = arith.constant 9.99999974E-6 : f32
    %12 = vector.broadcast %cst_4 : f32 to vector<8x1xf32>
    %13 = arith.addf %11, %12 : vector<8x1xf32>
    %14 = math.rsqrt %13 : vector<8x1xf32>
    %15 = vector.broadcast %14 : vector<8x1xf32> to vector<8x64xf32>
    %16 = arith.mulf %6, %15 : vector<8x64xf32>
    %c0_5 = arith.constant 0 : index
    %c0_6 = arith.constant 0 : index
    %17 = vector.load %arg3[%c0_5, %c0_6] : memref<64x64xf32, #tpu.memory_space<vmem>>, vector<64x64xf32>
    %cst_7 = arith.constant dense<0.000000e+00> : vector<8x64xf32>
    %18 = tpu.matmul %16, %17, %cst_7 {dimension_numbers = #tpu.dot_dimension_numbers<[1], [0], [0], [1], [0, 0, 1, 1], [], []>} : vector<8x64xf32>, vector<64x64xf32>, vector<8x64xf32> -> vector<8x64xf32>
    %c0_8 = arith.constant 0 : index
    %c0_9 = arith.constant 0 : index
    %19 = vector.load %arg4[%c0_8, %c0_9] : memref<1x64xf32, #tpu.memory_space<vmem>>, vector<1x64xf32>
    %20 = vector.broadcast %19 : vector<1x64xf32> to vector<8x64xf32>
    %21 = arith.addf %18, %20 : vector<8x64xf32>
    %c0_10 = arith.constant 0 : index
    %c0_11 = arith.constant 0 : index
    %22 = vector.load %arg5[%c0_10, %c0_11] : memref<8x64xf32, #tpu.memory_space<vmem>>, vector<8x64xf32>
    tpu.vector_store %arg5[%c0_10, %c0_11], %21 {strides = array<i32>} : memref<8x64xf32, #tpu.memory_space<vmem>>, vector<8x64xf32>,
    return
  }
  func.func @transform_0(%arg0: i32, %arg1: i32) -> (i32, i32) {
    %c0_i32 = arith.constant 0 : i32
    %c0_i32_0 = arith.constant 0 : i32
    return %arg0, %c0_i32 : i32, i32
  }
  func.func @transform_1(%arg0: i32, %arg1: i32) -> (i32, i32) {
    %c0_i32 = arith.constant 0 : i32
    %c0_i32_0 = arith.constant 0 : i32
    return %c0_i32, %arg1 : i32, i32
  }
  func.func @transform_2(%arg0: i32, %arg1: i32) -> (i32, i32) {
    %c0_i32 = arith.constant 0 : i32
    %c0_i32_0 = arith.constant 0 : i32
    return %c0_i32, %arg1 : i32, i32
  }
  func.func @transform_3(%arg0: i32, %arg1: i32) -> (i32, i32) {
    %c0_i32 = arith.constant 0 : i32
    return %arg0, %arg1 : i32, i32
  }
}

</mosaic_0001>

<bundles_post_ra>
// kernel: patch_merging.1
= control target key start
LH: loop header
LB: loop body
LE: loop exit
PB: predicated region body
PF: predicated region fallthrough
CT: control target
= control target key end

     0   :  { %s470_s12 = smov 0   ;;  %s472_s13 = smov 0   ;;  %s541_s0 = inlined_call_operand.vmem [shape: f32[10,64], index: 0, kind: input, shape index: {}]   ;;  %s542_s1 = inlined_call_operand.vmem [shape: f32[64,64], index: 1, kind: input, shape index: {}]   ;;  %s543_s2 = inlined_call_operand.vmem [shape: f32[1,64], index: 2, kind: input, shape index: {}]   ;;  %s544_s3 = inlined_call_operand.vmem [shape: f32[10,64], index: 3, kind: output, shape index: {}]  }
   0x1   :  { %s474_s14 = smov 0  }
   0x2 LB: > { %s25_s15 = sadd.s32 1, %s443_s13  ;;  %p389_p0 = scmp.ge.s32.totalorder %s447_s14, 1  ;;  %s447_s14 = sphi %s474_s14, %s13_s14   ;;  %s443_s13 = sphi %s472_s13, %s546_s13   ;;  %s439_s12 = sphi %s470_s12, %s545_s12  }
   0x3   : > { %p27_p1 = scmp.ge.s32.totalorder %s25_s15, 2  ;;  %p167_p2 = scmp.lt.s32.totalorder %s447_s14, 3 }
   0x5   : > { %s548_s15 = smov (%p27_p1, %s25_s15), 0  ;;  %p168_p3 = pnand %p389_p0, %p167_p2 }
   0x6   : > { %p199_p4 = scmp.lt.s32.totalorder (!%p168_p3), %s439_s12, 1 }
   0x7   : > { %171 = sbr.rel (%p168_p3) target bundleno = 409 (0x199), region = 32 }
   0xc   : > { %s550_s12 = smov (!%p199_p4, %s439_s12), 1  ;;  %vm218_vm0 = vcmask 523264   ;;  %v449_v2 = vmov 64.0   ;;  %v255_v14 = vld [vmem:[%s542_s1 + $0x38] sm:$0xff]  ;;  %v254_v15 = vld [vmem:[%s542_s1 + $0x30] sm:$0xff]  ;;  %v253_v16 = vld [vmem:[%s542_s1 + $0x28] sm:$0xff] }
   0xd   : > { %s390_s16 = sshll.u32 %s550_s12, 3  ;;  %421 = vrcp.f32 %v449_v2  ;;  %271 = vmatpush.msra.mxu0 %v255_v14  ;;  %v252_v17 = vld [vmem:[%s542_s1 + $0x20] sm:$0xff]  ;;  %v251_v18 = vld [vmem:[%s542_s1 + $0x18] sm:$0xff]  ;;  %v250_v19 = vld [vmem:[%s542_s1 + $0x10] sm:$0xff] }
   0xe   : > { %s202_s19 = scalar_lea.vmem %s541_s0, %s390_s16  ;;  %v249_v20 = vld [vmem:[%s542_s1 + $0x8] sm:$0xff]  ;;  %v248_v21 = vld [vmem:[%s542_s1] sm:$0xff]  ;;  %s216_s18 = scalar_lea.vmem %s544_s3, %s390_s16 }
   0xf   : > { %v217_v0 = vld [vmem:[%s202_s19] sm:$0xff]  ;;  %272 = vmatpush.msra.mxu0 %v254_v15 }
  0x10   : > { %v219_v1 = vsel %vm218_vm0, %v217_v0, 0.0  ;;  %v420_v33 = vld [vmem:[%s543_s2] ss:$0 sm:$0xff] }
  0x11   : > { %220 = vadd.xlane.f32.xlu0 %v219_v1  ;;  %273 = vmatpush.msra.mxu0 %v253_v16 }
  0x13   : > { %v422_v3 = vpop.eup %421  ;;  %274 = vmatpush.msra.mxu0 %v252_v17 }
  0x14   : > { %v223_v4 = vmul.f32 64.0, %v422_v3  ;;  %vm227_vm1 = vweird.f32 %v422_v3 }
  0x15   : > { %275 = vmatpush.msra.mxu0 %v251_v18 }
  0x16   : > { %v224_v5 = vsub.f32 1.0, %v223_v4 }
  0x17   : > { %276 = vmatpush.msra.mxu0 %v250_v19 }
  0x18   : > { %v225_v6 = vmul.f32 %v422_v3, %v224_v5 }
  0x19   : > { %277 = vmatpush.msra.mxu0 %v249_v20 }
  0x1a   : > { %v226_v7 = vadd.f32 %v422_v3, %v225_v6 }
  0x1b   : > { %278 = vmatpush.msra.mxu0 %v248_v21 }
  0x1c   : > { %v228_v8 = vsel %vm227_vm1, %v422_v3, %v226_v7 }
  0x84   : > { %v221_v9 = vpop.xlane.xlu0 %220 }
  0x85   : > { %v229_v10 = vmul.f32 %v228_v8, %v221_v9 }
  0x87   : > { %v230_v11 = vsub.f32 %v217_v0, %v229_v10 }
  0x89   : > { %v231_v12 = vmul.f32 %v230_v11, %v230_v11 }
  0x8b   : > { %v232_v13 = vsel %vm218_vm0, %v231_v12, 0.0 }
  0x8c   : > { %233 = vadd.xlane.f32.xlu0 %v232_v13 }
  0xff   : > { %v234_v22 = vpop.xlane.xlu0 %233 }
 0x100   : > { %v235_v23 = vmul.f32 %v234_v22, %v228_v8 }
 0x102   : > { %v236_v24 = vadd.f32 1e-05, %v235_v23 }
 0x104   : > { %423 = vrsqrt.f32 %v236_v24  ;;  %vm243_vm3 = vweird.f32 %v236_v24 }
 0x10a   : > { %v424_v25 = vpop.eup %423 }
 0x10b   : > { %v238_v26 = vmul.f32 %v424_v25, %v236_v24  ;;  %vm244_vm2 = vweird.f32 %v424_v25 }
 0x10c   : > { %vm245_vm4 = vmor %vm243_vm3, %vm244_vm2 }
 0x10d   : > { %v239_v27 = vmul.f32 %v424_v25, %v238_v26 }
 0x10f   : > { %v240_v28 = vmul.f32 0.5, %v239_v27 }
 0x111   : > { %v241_v29 = vsub.f32 1.5, %v240_v28 }
 0x113   : > { %v242_v30 = vmul.f32 %v424_v25, %v241_v29 }
 0x115   : > { %v246_v31 = vsel %vm245_vm4, %v424_v25, %v242_v30 }
 0x116   : > { %v247_v32 = vmul.f32 %v246_v31, %v230_v11 }
 0x118   : > { %392 = vmatmul.msk.f32.vlgmr.msra.gmra.mxu0 %vm218_vm0, %v247_v32 }
 0x195   : > { %v280_v34 = vpop.f32.mrf.mxu0 }
 0x196   : > { %v281_v35 = vadd.f32 %v420_v33, %v280_v34 }
 0x198   : > { %283 = vst.msk [vmem:[%s216_s18] sm:$0xff] %vm218_vm0, %v281_v35 }
 0x199 PF: > { %s13_s14 = sadd.s32 1, %s447_s14   ;;  %s545_s12 = smov %s443_s13 }
 0x19a   : > { %p10_p5 = scmp.ge.s32.totalorder %s13_s14, 4   ;;  %s546_s13 = smov %s548_s15 }
 0x19c   :  { %12 = sbr.rel (!%p10_p5) target bundleno = 2 (0x2), region = 68 }

</bundles_post_ra>
